<compile_context>
chip_gen: v6e
topology: v6e:2x2x1
jax: 0.10.0
libtpu: 0.0.40
codegen_flags: <defaults>
</compile_context>

<pallas_src>
import jax
import jax.numpy as jnp
from jax.experimental import pallas as pl
from jax.experimental.pallas import tpu as pltpu


_TARGET_BLOCK_BYTES = 2 * 1024 * 1024   # ~2 MiB x blocks: near HBM roofline, deep pipeline
_MIN_GRID_STEPS = 8                     # >= 4 steps per TensorCore on a 2-TC v7x chip


def _make_kernel(mid, tail_dtype, xt_as_input):
    """Kernel body. If xt_as_input, the per-batch mean over T arrives as a ref."""

    def kernel(*refs):
        if xt_as_input:
            x_ref, xt_ref, wc_ref, wm_ref, o_ref = refs
        else:
            x_ref, wc_ref, wm_ref, o_ref = refs

        x_in = x_ref[...]                          # (bblk, C, Tblk), native dtype
        x = x_in.astype(jnp.float32)
        bblk, C, T = x.shape

        wc = wc_ref[...]                           # (2*mid + 1, C) f32
        wm = wm_ref[...]                           # (5, mid) f32
        w2s_t = wc[0:mid]                          # (mid, C)  conv_seq[2].weight^T
        w1f = wc[mid:2 * mid]                      # (mid, C)  conv_feat[0].weight
        b2s = wc[2 * mid]                          # (C,)      conv_seq[2].bias
        w1s, b1s, b1f, w2f = wm[0], wm[1], wm[2], wm[3]
        b2f = wm[4, 0]                             # scalar    conv_feat[2].bias

        # ---- sequence branch: mean over channels, rank-mid 1x1 convs --------
        x_seq = jnp.mean(x, axis=1)                                    # (bblk, T)
        h1 = jnp.maximum(
            x_seq[:, None, :] * w1s[None, :, None] + b1s[None, :, None],
            0.0)                                                       # (bblk, mid, T)
        # mid -> C expansion on the (otherwise idle) MXU; batched over bblk so
        # the result lands directly in (bblk, C, T) layout with T on lanes.
        w2s_b = jnp.broadcast_to(w2s_t[None], (bblk, mid, C))
        seq_pre = jnp.einsum('bmc,bmt->bct', w2s_b, h1,
                             preferred_element_type=jnp.float32)
        seq_pre = seq_pre + b2s[None, :, None]                         # bias added once

        # ---- feature branch: per-batch scalar gate ---------------------------
        if xt_as_input:
            x_t = xt_ref[...][:, 0, :].astype(jnp.float32)             # (bblk, C)
        else:
            x_t = jnp.mean(x, axis=2)                                  # (bblk, C)
        xw = jax.lax.dot_general(x_t, w1f, (((1,), (1,)), ((), ())),
                                 preferred_element_type=jnp.float32)   # (bblk, mid)
        hf = jnp.maximum(xw + b1f[None, :], 0.0)
        s = jax.nn.sigmoid(
            jnp.sum(hf * w2f[None, :], axis=1, keepdims=True) + b2f)   # (bblk, 1)

        # ---- fused elementwise tail (bf16 for bf16 inputs: v6e/v7x EUP/VPU) --
        att = jax.nn.sigmoid(jax.nn.sigmoid(seq_pre.astype(tail_dtype))
                             + s.astype(tail_dtype)[:, :, None])
        o_ref[...] = (x_in.astype(tail_dtype) * att).astype(o_ref.dtype)

    return kernel


def _pick_blocks(B, C, T, itemsize, target_bytes):
    """Return (bblk, tblk); tblk == T means no sequence tiling."""
    plane = C * T * itemsize                      # one batch element's (C, T) slab
    if plane <= target_bytes:
        # Pack batch elements up to ~target_bytes, but keep >= _MIN_GRID_STEPS
        # grid steps so prologue/epilogue DMAs stay hidden behind compute.
        bblk = max(1, target_bytes // plane)
        bblk = min(bblk, max(1, B // min(B, _MIN_GRID_STEPS)))
        return min(bblk, B), T
    # Long sequence: tile T (the lane axis) in multiples of 128.
    tblk = max(128, ((target_bytes // (C * itemsize)) // 128) * 128)
    if tblk >= T:
        return 1, T
    return 1, tblk


def coordinate_attention(x, params, *, target_block_bytes=_TARGET_BLOCK_BYTES):
    """x: (B, C, T). params: canonical Conv1d weights, see init_params."""
    B, C, T = x.shape
    w1s, b1s, w2s, b2s, w1f, b1f, w2f, b2f = params
    mid = int(w1s.shape[0])
    f32 = jnp.float32

    # Pack the eight tiny Conv1d weights into two lane-dense operands.
    wc = jnp.concatenate(
        [jnp.asarray(w2s, f32).T.reshape(mid, C),      # conv_seq[2].weight^T
         jnp.asarray(w1f, f32).reshape(mid, C),        # conv_feat[0].weight
         jnp.asarray(b2s, f32).reshape(1, C)],         # conv_seq[2].bias
        axis=0)                                        # (2*mid + 1, C)
    wm = jnp.stack(
        [jnp.asarray(w1s, f32).reshape(mid),           # conv_seq[0].weight
         jnp.asarray(b1s, f32).reshape(mid),           # conv_seq[0].bias
         jnp.asarray(b1f, f32).reshape(mid),           # conv_feat[0].bias
         jnp.asarray(w2f, f32).reshape(mid),           # conv_feat[2].weight
         jnp.broadcast_to(jnp.asarray(b2f, f32).reshape(-1)[:1], (mid,))],
        axis=0)                                        # (5, mid)

    # bf16 elementwise tail only when the input itself is bf16 (v6e/v7x);
    # f32 inputs (and therefore v5e-style usage) keep the f32 tail.
    tail_dtype = jnp.bfloat16 if x.dtype == jnp.bfloat16 else jnp.float32
    bblk, tblk = _pick_blocks(B, C, T, x.dtype.itemsize, int(target_block_bytes))

    try:
        vmem_cap = int(pltpu.get_tpu_info().vmem_capacity_bytes)
    except Exception:
        vmem_cap = 64 * 1024 * 1024                    # v7x per-TensorCore VMEM
    vmem_limit = int(min(vmem_cap * 5 // 8, 80 * 1024 * 1024))

    cost = pl.CostEstimate(
        flops=B * C * T * (2 * mid + 10),
        transcendentals=2 * B * C * T,
        bytes_accessed=2 * B * C * T * x.dtype.itemsize,
    )

    if tblk == T:
        # Default path: full-T blocks, bblk batch elements per grid step.
        grid = (pl.cdiv(B, bblk),)
        in_specs = [
            pl.BlockSpec((bblk, C, T), lambda b: (b, 0, 0)),
            pl.BlockSpec(wc.shape, lambda b: (0, 0)),
            pl.BlockSpec(wm.shape, lambda b: (0, 0)),
        ]
        out_specs = pl.BlockSpec((bblk, C, T), lambda b: (b, 0, 0))
        operands = (x, wc, wm)
        semantics = ("parallel",)
        kernel = _make_kernel(mid, tail_dtype, xt_as_input=False)
    else:
        # Long-sequence path: tile T.  The feature-branch mean over T is
        # computed once here (one extra pass over x by XLA) so each
        # (C, tblk) tile is independent of the others.
        x_t = jnp.mean(x.astype(f32), axis=2).reshape(B, 1, C)
        grid = (B, pl.cdiv(T, tblk))
        in_specs = [
            pl.BlockSpec((1, C, tblk), lambda b, t: (b, 0, t)),
            pl.BlockSpec((1, 1, C), lambda b, t: (b, 0, 0)),
            pl.BlockSpec(wc.shape, lambda b, t: (0, 0)),
            pl.BlockSpec(wm.shape, lambda b, t: (0, 0)),
        ]
        out_specs = pl.BlockSpec((1, C, tblk), lambda b, t: (b, 0, t))
        operands = (x, x_t, wc, wm)
        semantics = ("parallel", "parallel")
        kernel = _make_kernel(mid, tail_dtype, xt_as_input=True)

    return pl.pallas_call(
        kernel,
        out_shape=jax.ShapeDtypeStruct((B, C, T), x.dtype),
        grid_spec=pltpu.PrefetchScalarGridSpec(
            num_scalar_prefetch=0,
            grid=grid,
            in_specs=in_specs,
            out_specs=out_specs,
        ),
        compiler_params=pltpu.CompilerParams(
            dimension_semantics=semantics,
            vmem_limit_bytes=vmem_limit),
        cost_estimate=cost,
    )(*operands)


def init_params(key, channels, reduction=8, dtype=jnp.float32):
    """Weights matching the PyTorch module (kernel-size-1 Conv1d, squeezed)."""
    mid = channels // reduction
    ks = jax.random.split(key, 8)
    s = 0.1
    w1s = s * jax.random.normal(ks[0], (mid, 1), dtype)         # conv_seq[0].weight
    b1s = s * jax.random.normal(ks[1], (mid,), dtype)           # conv_seq[0].bias
    w2s = s * jax.random.normal(ks[2], (channels, mid), dtype)  # conv_seq[2].weight
    b2s = s * jax.random.normal(ks[3], (channels,), dtype)      # conv_seq[2].bias
    w1f = s * jax.random.normal(ks[4], (mid, channels), dtype)  # conv_feat[0].weight
    b1f = s * jax.random.normal(ks[5], (mid,), dtype)           # conv_feat[0].bias
    w2f = s * jax.random.normal(ks[6], (1, mid), dtype)         # conv_feat[2].weight
    b2f = s * jax.random.normal(ks[7], (1,), dtype)             # conv_feat[2].bias
    return (w1s, b1s, w2s, b2s, w1f, b1f, w2f, b2f)


def reference(x, params):
    """Pure-JAX mirror of the PyTorch forward pass."""
    w1s, b1s, w2s, b2s, w1f, b1f, w2f, b2f = params
    x_seq = jnp.mean(x, axis=1, keepdims=True)                               # (B,1,T)
    h1 = jax.nn.relu(w1s[None, :, :] * x_seq + b1s[None, :, None])           # (B,mid,T)
    seq = jax.nn.sigmoid(jnp.einsum('cm,bmt->bct', w2s, h1) + b2s[None, :, None])
    x_t = jnp.mean(x, axis=2)                                                # (B,C)
    hf = jax.nn.relu(jnp.einsum('mc,bc->bm', w1f, x_t) + b1f[None, :])       # (B,mid)
    s = jax.nn.sigmoid(jnp.einsum('om,bm->bo', w2f, hf) + b2f[None, :])      # (B,1)
    att = jax.nn.sigmoid(seq + s[:, :, None])                                # (B,C,T)
    return x * att


def _check(x, params, **kw):
    out = jax.block_until_ready(coordinate_attention(x, params, **kw))
    ref = reference(x, params)
    assert out.shape == x.shape and out.dtype == x.dtype
    # Tolerance is loose-ish because the mid->C expansion runs on the MXU,
    # whose default f32 precision may use bf16 passes; structural bugs would
    # show up as O(1e-2) or larger errors.
    err = float(jnp.max(jnp.abs(out - ref)))
    assert jnp.allclose(out, ref, atol=2e-3, rtol=2e-3), err
    return err


if __name__ == "__main__":
    key = jax.random.PRNGKey(0)
    kx, kp, kx2, kp2, kx3, kp3 = jax.random.split(key, 6)

    # Default path: full-T blocks, 8 grid steps.
    x = jax.random.normal(kx, (8, 32, 256), jnp.float32)
    _check(x, init_params(kp, 32, reduction=8))

    # Long-sequence path: forced T tiling (tblk = 256, grid = (5, 4)).
    x2 = jax.random.normal(kx2, (5, 16, 1024), jnp.float32)
    _check(x2, init_params(kp2, 16, reduction=8), target_block_bytes=16 * 1024)

    # Non-divisor batch blocking: bblk = 2 over B = 17 -> masked partial block.
    x3 = jax.random.normal(kx3, (17, 8, 128), jnp.float32)
    _check(x3, init_params(kp3, 8, reduction=8))

    print("KERNEL_OK")
</pallas_src>

<mosaic_0001>
module attributes {stable_mosaic.version = 11 : i64} {
  func.func @kernel(%arg0: i32, %arg1: memref<1x32x256xf32, #tpu.memory_space<vmem>>, %arg2: memref<9x32xf32, #tpu.memory_space<vmem>>, %arg3: memref<5x4xf32, #tpu.memory_space<vmem>>, %arg4: memref<1x32x256xf32, #tpu.memory_space<vmem>>) attributes {dimension_semantics = [#tpu.dimension_semantics<parallel>], iteration_bounds = array<i64: 8>, scalar_prefetch = 0 : i64, scratch_operands = 0 : i64, tpu.core_type = #tpu.core_type<tc>, window_params = [{transform_indices = @transform_0, window_bounds = array<i64: 1, 32, 256>}, {pipeline_mode = #tpu.pipeline_mode<synchronous>, transform_indices = @transform_1, window_bounds = array<i64: 9, 32>}, {pipeline_mode = #tpu.pipeline_mode<synchronous>, transform_indices = @transform_2, window_bounds = array<i64: 5, 4>}, {transform_indices = @transform_3, window_bounds = array<i64: 1, 32, 256>}]} {
    %c0 = arith.constant 0 : index
    %c0_0 = arith.constant 0 : index
    %c0_1 = arith.constant 0 : index
    %0 = vector.load %arg1[%c0, %c0_0, %c0_1] : memref<1x32x256xf32, #tpu.memory_space<vmem>>, vector<1x32x256xf32>
    %c0_2 = arith.constant 0 : index
    %c0_3 = arith.constant 0 : index
    %1 = vector.load %arg2[%c0_2, %c0_3] : memref<9x32xf32, #tpu.memory_space<vmem>>, vector<9x32xf32>
    %c0_4 = arith.constant 0 : index
    %c0_5 = arith.constant 0 : index
    %2 = vector.load %arg3[%c0_4, %c0_5] : memref<5x4xf32, #tpu.memory_space<vmem>>, vector<5x4xf32>
    %3 = vector.extract_strided_slice %1 {offsets = [0, 0], sizes = [4, 32], strides = [1, 1]} : vector<9x32xf32> to vector<4x32xf32>
    %4 = vector.extract_strided_slice %1 {offsets = [4, 0], sizes = [4, 32], strides = [1, 1]} : vector<9x32xf32> to vector<4x32xf32>
    %5 = vector.extract_strided_slice %1 {offsets = [8, 0], sizes = [1, 32], strides = [1, 1]} : vector<9x32xf32> to vector<1x32xf32>
    %6 = vector.shape_cast %5 : vector<1x32xf32> to vector<32xf32>
    %7 = vector.extract_strided_slice %2 {offsets = [0, 0], sizes = [1, 4], strides = [1, 1]} : vector<5x4xf32> to vector<1x4xf32>
    %8 = vector.shape_cast %7 : vector<1x4xf32> to vector<4xf32>
    %9 = vector.extract_strided_slice %2 {offsets = [1, 0], sizes = [1, 4], strides = [1, 1]} : vector<5x4xf32> to vector<1x4xf32>
    %10 = vector.shape_cast %9 : vector<1x4xf32> to vector<4xf32>
    %11 = vector.extract_strided_slice %2 {offsets = [2, 0], sizes = [1, 4], strides = [1, 1]} : vector<5x4xf32> to vector<1x4xf32>
    %12 = vector.shape_cast %11 : vector<1x4xf32> to vector<4xf32>
    %13 = vector.extract_strided_slice %2 {offsets = [3, 0], sizes = [1, 4], strides = [1, 1]} : vector<5x4xf32> to vector<1x4xf32>
    %14 = vector.shape_cast %13 : vector<1x4xf32> to vector<4xf32>
    %15 = vector.extract_strided_slice %2 {offsets = [4, 0], sizes = [1, 1], strides = [1, 1]} : vector<5x4xf32> to vector<1x1xf32>
    %16 = vector.extract %15[0, 0] : f32 from vector<1x1xf32>
    %cst = arith.constant dense<0.000000e+00> : vector<1x256xf32>
    %17 = vector.multi_reduction <add>, %0, %cst [1] : vector<1x32x256xf32> to vector<1x256xf32>
    %cst_6 = arith.constant 3.200000e+01 : f32
    %18 = vector.broadcast %cst_6 : f32 to vector<1x256xf32>
    %19 = arith.divf %17, %18 : vector<1x256xf32>
    %20 = vector.shape_cast %19 : vector<1x256xf32> to vector<1x1x256xf32>
    %21 = vector.shape_cast %8 : vector<4xf32> to vector<1x4x1xf32>
    %22 = vector.broadcast %20 : vector<1x1x256xf32> to vector<1x4x256xf32>
    %23 = vector.broadcast %21 : vector<1x4x1xf32> to vector<1x4x256xf32>
    %24 = arith.mulf %22, %23 : vector<1x4x256xf32>
    %25 = vector.shape_cast %10 : vector<4xf32> to vector<1x4x1xf32>
    %26 = vector.broadcast %25 : vector<1x4x1xf32> to vector<1x4x256xf32>
    %27 = arith.addf %24, %26 : vector<1x4x256xf32>
    %cst_7 = arith.constant 0.000000e+00 : f32
    %28 = vector.broadcast %cst_7 : f32 to vector<1x4x256xf32>
    %29 = arith.maximumf %27, %28 : vector<1x4x256xf32>
    %30 = vector.shape_cast %3 : vector<4x32xf32> to vector<1x4x32xf32>
    "tpu.trace_start"() <{level = 10 : i32, message = "bmc,bmt->bct"}> : () -> ()
    %cst_8 = arith.constant dense<0.000000e+00> : vector<1x32x256xf32>
    %31 = tpu.matmul %30, %29, %cst_8 {dimension_numbers = #tpu.dot_dimension_numbers<[1], [1], [2], [2], [0, 0, 0, 2, 1, 2], [0], [0]>} : vector<1x4x32xf32>, vector<1x4x256xf32>, vector<1x32x256xf32> -> vector<1x32x256xf32>
    "tpu.trace_stop"() : () -> ()
    %32 = vector.shape_cast %6 : vector<32xf32> to vector<1x32x1xf32>
    %33 = vector.broadcast %32 : vector<1x32x1xf32> to vector<1x32x256xf32>
    %34 = arith.addf %31, %33 : vector<1x32x256xf32>
    %cst_9 = arith.constant dense<0.000000e+00> : vector<1x32xf32>
    %35 = vector.multi_reduction <add>, %0, %cst_9 [2] : vector<1x32x256xf32> to vector<1x32xf32>
    %cst_10 = arith.constant 2.560000e+02 : f32
    %36 = vector.broadcast %cst_10 : f32 to vector<1x32xf32>
    %37 = arith.divf %35, %36 : vector<1x32xf32>
    %cst_11 = arith.constant dense<0.000000e+00> : vector<1x4xf32>
    %38 = tpu.matmul %37, %4, %cst_11 {dimension_numbers = #tpu.dot_dimension_numbers<[1], [1], [0], [0], [0, 0, 1, 0], [], []>} : vector<1x32xf32>, vector<4x32xf32>, vector<1x4xf32> -> vector<1x4xf32>
    %39 = vector.shape_cast %12 : vector<4xf32> to vector<1x4xf32>
    %40 = arith.addf %38, %39 : vector<1x4xf32>
    %cst_12 = arith.constant 0.000000e+00 : f32
    %41 = vector.broadcast %cst_12 : f32 to vector<1x4xf32>
    %42 = arith.maximumf %40, %41 : vector<1x4xf32>
    %43 = vector.shape_cast %14 : vector<4xf32> to vector<1x4xf32>
    %44 = arith.mulf %42, %43 : vector<1x4xf32>
    %cst_13 = arith.constant dense<0.000000e+00> : vector<1xf32>
    %45 = vector.multi_reduction <add>, %44, %cst_13 [1] : vector<1x4xf32> to vector<1xf32>
    %46 = vector.shape_cast %45 : vector<1xf32> to vector<1x1xf32>
    %47 = vector.broadcast %16 : f32 to vector<1x1xf32>
    %48 = arith.addf %46, %47 : vector<1x1xf32>
    %49 = arith.negf %48 : vector<1x1xf32>
    %50 = math.exp %49 : vector<1x1xf32>
    %cst_14 = arith.constant 1.000000e+00 : f32
    %51 = vector.broadcast %cst_14 : f32 to vector<1x1xf32>
    %52 = arith.addf %51, %50 : vector<1x1xf32>
    %53 = arith.divf %51, %52 : vector<1x1xf32>
    %54 = arith.negf %34 : vector<1x32x256xf32>
    %55 = math.exp %54 : vector<1x32x256xf32>
    %cst_15 = arith.constant 1.000000e+00 : f32
    %56 = vector.broadcast %cst_15 : f32 to vector<1x32x256xf32>
    %57 = arith.addf %56, %55 : vector<1x32x256xf32>
    %58 = arith.divf %56, %57 : vector<1x32x256xf32>
    %59 = vector.shape_cast %53 : vector<1x1xf32> to vector<1x1x1xf32>
    %60 = vector.broadcast %59 : vector<1x1x1xf32> to vector<1x32x256xf32>
    %61 = arith.addf %58, %60 : vector<1x32x256xf32>
    %62 = arith.negf %61 : vector<1x32x256xf32>
    %63 = math.exp %62 : vector<1x32x256xf32>
    %cst_16 = arith.constant 1.000000e+00 : f32
    %64 = vector.broadcast %cst_16 : f32 to vector<1x32x256xf32>
    %65 = arith.addf %64, %63 : vector<1x32x256xf32>
    %66 = arith.divf %64, %65 : vector<1x32x256xf32>
    %67 = arith.mulf %0, %66 : vector<1x32x256xf32>
    %c0_17 = arith.constant 0 : index
    %c0_18 = arith.constant 0 : index
    %c0_19 = arith.constant 0 : index
    %68 = vector.load %arg4[%c0_17, %c0_18, %c0_19] : memref<1x32x256xf32, #tpu.memory_space<vmem>>, vector<1x32x256xf32>
    tpu.vector_store %arg4[%c0_17, %c0_18, %c0_19], %67 {strides = array<i32>} : memref<1x32x256xf32, #tpu.memory_space<vmem>>, vector<1x32x256xf32>,
    return
  }
  func.func @transform_0(%arg0: i32) -> (i32, i32, i32) {
    %c0_i32 = arith.constant 0 : i32
    %c0_i32_0 = arith.constant 0 : i32
    %c0_i32_1 = arith.constant 0 : i32
    return %arg0, %c0_i32, %c0_i32_0 : i32, i32, i32
  }
  func.func @transform_1(%arg0: i32) -> (i32, i32) {
    %c0_i32 = arith.constant 0 : i32
    %c0_i32_0 = arith.constant 0 : i32
    %c0_i32_1 = arith.constant 0 : i32
    return %c0_i32, %c0_i32_0 : i32, i32
  }
  func.func @transform_2(%arg0: i32) -> (i32, i32) {
    %c0_i32 = arith.constant 0 : i32
    %c0_i32_0 = arith.constant 0 : i32
    %c0_i32_1 = arith.constant 0 : i32
    return %c0_i32, %c0_i32_0 : i32, i32
  }
  func.func @transform_3(%arg0: i32) -> (i32, i32, i32) {
    %c0_i32 = arith.constant 0 : i32
    %c0_i32_0 = arith.constant 0 : i32
    %c0_i32_1 = arith.constant 0 : i32
    return %arg0, %c0_i32, %c0_i32_0 : i32, i32, i32
  }
}

</mosaic_0001>

<bundles_post_ra>
// kernel: tpu_custom_call.1
= control target key start
LH: loop header
LB: loop body
LE: loop exit
PB: predicated region body
PF: predicated region fallthrough
CT: control target
= control target key end

     0   :  { %8 = vsyncpa [#allocation3], 0  ;;  %s1395_s0 = inlined_call_operand.hbm [shape: f32[8,32,256], index: 0, kind: input, shape index: {}]   ;;  %s1396_s1 = inlined_call_operand.hbm [shape: f32[9,32], index: 1, kind: input, shape index: {}]   ;;  %s1397_s2 = inlined_call_operand.vmem [shape: f32[5,4], index: 2, kind: input, shape index: {}]   ;;  %s1398_s3 = inlined_call_operand.hbm [shape: f32[8,32,256], index: 3, kind: output, shape index: {}]  }
   0x1   :  { %10 = vsyncpa [#allocation3 + $0x1], 0 }
   0x2   :  { %11 = vsyncpa [#allocation6], 0 }
   0x3   :  { %12 = vsyncpa [#allocation4], 0 }
   0x4   :  { %14 = vsyncpa [#allocation4 + $0x1], 0  ;;  %s1126_s12 = smov 0   ;;  %s1128_s13 = smov 0  }
   0x5   :  { %s1130_s14 = smov 0   ;;  %s1132_s15 = smov 0  }
   0x6 LB: > { %s1147_s16 = sadd.s32 4294967295, %s1093_s15   ;;  %s783_s17 = sadd.s32 4294967294, %s1093_s15   ;;  %s1093_s15 = sphi %s1132_s15, %s1419_s15   ;;  %s1089_s14 = sphi %s1130_s14, %s1418_s14   ;;  %s1085_s13 = sphi %s1128_s13, %s1417_s13   ;;  %s1081_s12 = sphi %s1126_s12, %s1416_s12  }
   0x7   : > { %p40_p0 = scmp.ne.s32.totalorder %s1085_s13, %s1081_s12  ;;  %p1399_p1 = scmp.eq.s32.totalorder %s1147_s16, 0 }
   0x8   : > { %p112_p3 = scmp.eq.s32.totalorder %s783_s17, 7  ;;  %p784_p5 = scmp.ge.s32.totalorder %s1093_s15, 1 }
   0x9   : > { %p1156_p4 = por %p1399_p1, %p40_p0  ;;  %p119_p7 = scmp.lt.s32.totalorder %s1093_s15, 9 }
   0xa   : > { %p1161_p6 = por %p112_p3, %p40_p0  ;;  %s1095_s21 = smov [#allocation5]  }
   0xb   : > { %s1403_s18 = scalar_select %p1156_p4, 1, 0 }
   0xc   : > { %s1404_s19 = scalar_select %p1161_p6, 1, 0 }
   0xd   : > { %p1166_p8 = pnand %p784_p5, %p119_p7  ;;  %s131_s22 = sshll.u32 %s1095_s21, 4  ;;  %s132_s22 = int_to_ptr.vmem [resolvable:$true] %s131_s22 }
   0xe   : > { %s1179_s24 = sadd.s32 1, %s1093_s15   ;;  %s27_s25 = sadd.s32 1, %s1089_s14 }
   0xf   : > { %s1405_s20 = scalar_select %p1166_p8, 1, 0 }
  0x10   : > { %p846_p9 = pneg %p1166_p8  ;;  %s24_s26 = ssub.s32 %s1093_s15, %s1179_s24 }
  0x11   : > { %s982_s27 = scalar_lea.vmem %s132_s22, 256  ;;  %p990_p3 = scmp.lt.s32.totalorder %s132_s22, %s132_s22 }
  0x12   : > { %p1174_p10 = pnand %p846_p9, %p1399_p1  ;;  %p983_p12 = scmp.ne.s32.totalorder %s132_s22, %s982_s27 }
  0x13   : > { %p991_p5 = scmp.lt.s32.totalorder %s982_s27, %s982_s27 }
  0x14   : > { %p973_p11 = pneg %p1174_p10 }
  0x15   : > { %p992_p7 = por %p991_p5, %p990_p3 }
  0x16   : > { %p985_p13 = pnand %p983_p12, %p973_p11 }
  0x18   : > { %p986_p0 = pneg %p985_p13 }
  0x1a   : > { %p993_p2 = pnand %p992_p7, %p986_p0 }
  0x1c   : > { %996 = shalt.err (!%p993_p2)
}
  0x1d   : > { %s1096_s28 = smov 128   ;;  %s1097_s29 = smov 8  }
  0x1e   : > { %849 = dma.hbm_to_vmem [thread:$0]  (!%p1174_p10), %s1396_s1, 256, %s132_s22, [#allocation6], %s1096_s28, %s1096_s28, %s1097_s29  }
  0x1f   : > { %p25_p9 = scmp.eq.s32.totalorder %s24_s26, 0  ;;  %p34_p11 = scmp.ne.s32.totalorder %s1089_s14, %s1085_s13 }
  0x20   : > { %p35_p12 = scmp.eq.s32.totalorder %s1093_s15, 0  ;;  %p859_p2 = scmp.lt.s32.totalorder %s1093_s15, 8 }
  0x21   : > { %s1196_s5 = scalar_select %p25_p9, %s1089_s14, %s27_s25  }
  0x22   : > { %p36_p13 = por %p35_p12, %p34_p11  ;;  %p1407_p0 = scmp.eq.s32.totalorder %s1147_s16, 7 }
  0x23   : > { %s148_s7 = sand.u32 1, %s1089_s14   ;;  %s825_s8 = sshll.u32 %s1093_s15, 10 }
  0x24   : > { %p1200_p3 = por %p1407_p0, %p34_p11  ;;  %s787_s9 = sshll.u32 %s148_s7, 6 }
  0x25   : > { %s1209_s17 = scalar_lea.hbm %s1395_s0, %s825_s8  ;;  %s152_s21 = scalar_lea.vmem [#allocation2], %s787_s9 }
  0x26   : > { %s1408_s6 = scalar_select %p1200_p3, 1, 0 }
  0x27   : > { %s159_s22 = sshll.u32 %s152_s21, 4  ;;  %p1211_p10 = pnand %p859_p2, %p36_p13  ;;  %s1215_s22 = int_to_ptr.vmem [resolvable:$true] %s159_s22 }
  0x28   : > { %s1217_s25 = scalar_lea.sflag [#allocation3], %s148_s7  ;;  %s997_s26 = scalar_lea.hbm %s1209_s17, 1024 }
  0x29   : > { %p998_p5 = scmp.ne.s32.totalorder %s1209_s17, %s997_s26  ;;  %p999_p7 = pneg %p1211_p10 }
  0x2a   : > { %s1002_s29 = scalar_lea.hbm %s1395_s0, 8192  ;;  %p1003_p12 = scmp.lt.s32.totalorder %s1209_s17, %s1395_s0 }
  0x2b   : > { %p1000_p9 = pnand %p999_p7, %p998_p5  ;;  %p1004_p2 = scmp.lt.s32.totalorder %s1002_s29, %s997_s26 }
  0x2d   : > { %p1001_p11 = pneg %p1000_p9  ;;  %p1005_p13 = por %p1004_p2, %p1003_p12 }
  0x2f   : > { %p1006_p0 = pnand %p1005_p13, %p1001_p11 }
  0x31   : > { %1009 = shalt.err (!%p1006_p0)
}
  0x32   : > { %s1010_s7 = scalar_lea.vmem %s1215_s22, 1024  ;;  %s1098_s8 = smov [#allocation2]  }
  0x33   : > { %p1011_p1 = scmp.ne.s32.totalorder %s1215_s22, %s1010_s7  ;;  %s1015_s9 = sshll.u32 %s1098_s8, 4  ;;  %s1016_s9 = int_to_ptr.vmem [resolvable:$false] %s1015_s9 }
  0x34   : > { %s1017_s10 = scalar_lea.vmem %s1016_s9, 2048  ;;  %p1018_p9 = scmp.lt.s32.totalorder %s1215_s22, %s1016_s9 }
  0x35   : > { %p1013_p6 = pnand %p1011_p1, %p999_p7  ;;  %p1019_p3 = scmp.lt.s32.totalorder %s1017_s10, %s1010_s7 }
  0x37   : > { %p1014_p5 = pneg %p1013_p6  ;;  %p1020_p4 = por %p1019_p3, %p1018_p9 }
  0x39   : > { %p1021_p8 = pnand %p1020_p4, %p1014_p5 }
  0x3b   : > { %1024 = shalt.err (!%p1021_p8)
}
  0x3c   : > { %s1099_s11 = smov 256   ;;  %s1100_s21 = smov 16  }
  0x3d   : > { %853 = dma.hbm_to_vmem [thread:$0]  (!%p1211_p10), %s1209_s17, 1024, %s1215_s22, %s1217_s25, %s1099_s11, %s1099_s11, %s1100_s21  }
  0x3e   : > { %p1410_p1 = scmp.ne.s32.totalorder %s1405_s20, 0 }
  0x3f   : > { %s1241_s26 = sand.u32 (!%p1410_p1), 1, %s1085_s13   ;;  %p1411_p4 = scmp.ne.s32.totalorder (!%p1410_p1), %s1403_s18, 0 }
  0x40   : > { %171 = sbr.rel (%p1410_p1) target bundleno = 710 (0x2c6), region = 32  ;;  %s791_s27 = sshll.u32 (!%p1410_p1), %s1241_s26, 6 }
  0x41   : > { %s174_s28 = scalar_lea.sflag (!%p1410_p1), [#allocation3], %s1241_s26  ;;  %s177_s29 = scalar_lea.vmem (!%p1410_p1), [#allocation2], %s791_s27 }
  0x45   : > { %1068 = dma.done.wait (%p1411_p4), %s174_s28, 1024  }
  0x46   : > { %1070 = vsyncadd (%p1411_p4), %s174_s28, 4294966272  ;;  %p1412_p6 = scmp.eq.s32.totalorder %s1147_s16, 0 }
  0x48   : > { %1072 = dma.done.wait (%p1412_p6), [#allocation6], 256   ;;  %p1413_p8 = pmov %p1412_p6 }
  0x49   : > { %v238_v0 = vlaneseq  ;;  %v1264_v5 = vld [vmem:[%s177_s29 + $0x20] sm:$0xff]  ;;  %v1266_v6 = vld [vmem:[%s177_s29 + $0x28] sm:$0xff]  ;;  %v1274_v10 = vld [vmem:[%s177_s29 + $0x30] sm:$0xff]  ;;  %v1101_v27 = vmov 0.0   ;;  %vm450_vm0 = vcmask 130112   ;;  %vm457_vm1 = vcmask 195712  }
  0x4a   : > { %1074 = vsyncadd (%p1413_p8), [#allocation6], 4294967040  ;;  %v1268_v7 = vld [vmem:[%s177_s29] sm:$0xff]  ;;  %v424_v8 = vadd.f32 %v1266_v6, %v1264_v5  ;;  %v1272_v9 = vld [vmem:[%s177_s29 + $0x8] sm:$0xff]  ;;  %393 = vmatprep.mubr.f32.mxu0 %v1101_v27  ;;  %411 = vmatprep.mubr.f32.mxu1 %v1101_v27  ;;  %vm464_vm2 = vcmask 261312   ;;  %vm322_vm3 = vcmask 1043456  }
  0x4b   : > { %v1255_v1 = vand.u32 127, %v238_v0  ;;  %v1257_v2 = vshrl.u32 %v238_v0, 7  ;;  %v1276_v11 = vld [vmem:[%s177_s29 + $0x38] sm:$0xff]  ;;  %v418_v12 = vadd.f32 %v1272_v9, %v1268_v7  ;;  %v1280_v13 = vld [vmem:[%s177_s29 + $0x10] sm:$0xff]  ;;  %v1296_v21 = vld [vmem:[%s1397_s2] sm:$0x1f] }
  0x4c   : > { %v1282_v14 = vld [vmem:[%s177_s29 + $0x18] sm:$0xff]  ;;  %425 = vadd.xlane.f32.xlu1 %v424_v8  ;;  %v427_v15 = vadd.f32 %v1276_v11, %v1274_v10  ;;  %v1307_v28 = vld [vmem:[#allocation5] sm:$0xff]  ;;  %v1310_v29 = vld [vmem:[#allocation5 + $0x8] ss:$0 sm:$0xff]  ;;  %v217_v31 = vadd.f32 %v1280_v13, %v1268_v7  ;;  %vm309_vm4 = vcmask 31744   ;;  %vm471_vm5 = vcmask 261120  }
  0x4d   : > { %v1260_v3 = vadd.s32 4294967280, %v1255_v1  ;;  %419 = vadd.xlane.f32.xlu0 %v418_v12  ;;  %v421_v16 = vadd.f32 %v1282_v14, %v1280_v13  ;;  %v443_v17 = vsub.s32 %v1255_v1, %v1257_v2  ;;  %v249_v18 = vsub.s32 1, %v1257_v2  ;;  %s203_s22 = scalar_lea.vmem [#allocation7], %s791_s27  ;;  %s826_s23 = sshll.u32 %s1147_s16, 10 }
  0x4e   : > { %v459_v19 = vadd.s32 4294967272, %v1255_v1  ;;  %v445_v20 = vadd.s32 4294967288, %v1255_v1  ;;  %v240_v25 = vsub.s32 0, %v1257_v2  ;;  %v226_v30 = vadd.f32 %v1282_v14, %v1272_v9  ;;  %s700_s25 = sshll.u32 %s203_s22, 4  ;;  %s1350_s7 = scalar_lea.hbm %s1398_s3, %s826_s23  ;;  %s1352_s25 = int_to_ptr.vmem [resolvable:$true] %s700_s25 }
  0x4f   : > { %v455_v4 = vsub.s32 %v1260_v3, %v1257_v2  ;;  %v250_v24 = vrot.slane %v1296_v21, %v249_v18  ;;  %v218_v33 = vadd.f32 %v217_v31, %v1264_v5  ;;  %vm1102_vm6 = vmmov 0   ;;  %s687_s16 = scalar_lea.sflag [#allocation4], %s1241_s26  ;;  %s1025_s8 = scalar_lea.vmem %s1352_s25, 1024 }
  0x50   : > { %428 = vadd.xlane.f32.xlu1 %v427_v15  ;;  %v462_v22 = vsub.s32 %v459_v19, %v1257_v2  ;;  %v448_v23 = vsub.s32 %v445_v20, %v1257_v2  ;;  %v241_v26 = vrot.slane %v1296_v21, %v240_v25  ;;  %v227_v32 = vadd.f32 %v226_v30, %v1266_v6  ;;  %p1026_p3 = scmp.ne.s32.totalorder %s1352_s25, %s1025_s8  ;;  %p1414_p10 = scmp.ne.s32.totalorder %s1408_s6, 0 }
  0x51   : > { %422 = vadd.xlane.f32.xlu0 %v421_v16  ;;  %v219_v35 = vadd.f32 %v218_v33, %v1274_v10  ;;  %v469_v30 = vrot.slane %v1296_v21, 2  ;;  %vm550_vm7 = vcmask 24576   ;;  %s1103_s9 = smov [#allocation7]  }
  0x52   : > { %v228_v34 = vadd.f32 %v227_v32, %v1276_v11  ;;  %p1027_p7 = pnand %p1026_p3, %p1414_p10  ;;  %s1029_s10 = sshll.u32 %s1103_s9, 4  ;;  %s1030_s10 = int_to_ptr.vmem [resolvable:$false] %s1029_s10 }
  0x53   : > { %v220_v37 = vrot.slane %v219_v35, 4  ;;  %s1031_s11 = scalar_lea.vmem %s1030_s10, 2048  ;;  %p1032_p12 = scmp.lt.s32.totalorder %s1352_s25, %s1030_s10 }
  0x54   : > { %v229_v36 = vrot.slane %v228_v34, 4  ;;  %p1028_p11 = pneg %p1027_p7  ;;  %p1033_p2 = scmp.lt.s32.totalorder %s1031_s11, %s1025_s8 }
  0x55   : > { %v221_v39 = vadd.f32 %v220_v37, %v219_v35 }
  0x56   : > { %v230_v38 = vadd.f32 %v229_v36, %v228_v34  ;;  %v547_v34 = vrot.slane %v1296_v21, 3  ;;  %p1034_p13 = por %p1033_p2, %p1032_p12 }
  0x57   : > { %v222_v41 = vrot.slane %v221_v39, 2 }
  0x58   : > { %v231_v40 = vrot.slane %v230_v38, 2  ;;  %p1035_p0 = pnand %p1034_p13, %p1028_p11 }
  0x59   : > { %v223_v43 = vadd.f32 %v222_v41, %v221_v39 }
  0x5a   : > { %v232_v42 = vadd.f32 %v231_v40, %v230_v38 }
  0x5b   : > { %v224_v45 = vrot.slane %v223_v43, 1 }
  0x5c   : > { %v233_v44 = vrot.slane %v232_v42, 1 }
  0x5d   : > { %v225_v50 = vadd.f32 %v224_v45, %v223_v43 }
  0x5e   : > { %v234_v48 = vadd.f32 %v233_v44, %v232_v42 }
  0x5f   : > { %v236_v58 = vmul.f32 0.03125, %v225_v50 }
  0x60   : > { %v237_v54 = vmul.f32 0.03125, %v234_v48 }
  0x61   : > { %252 = vbcast.lane.b32.xlu1 %v250_v24, 256  ;;  %v215_v24 = vrot.slane %v1296_v21, 4 }
  0x63   : > { %836 = vpush %v215_v24 }
  0x67   : > { %243 = vbcast.lane.b32.xlu0 %v241_v26, 256 }
  0x6b   : > { %263 = vbcast.lane.b32.xlu0 %v1310_v29, 256 }
  0x6f   : > { %271 = vbcast.lane.b32.xlu0 %v1310_v29, 272 }
  0x8a   : > { %277 = vxpose.xlu1.b32.start.end [1/1] (short) (narrow) %v1307_v28, 32 }
  0x94   : > { %s837_s17 = spop %836 }
  0xb4   : > { %267 = vbcast.lane.b32.xlu1 %v1310_v29, 264 }
  0xd5   : > { %v426_v46 = vpop.xlane.xlu1 %425 }
  0xd6   : > { %v420_v47 = vpop.xlane.xlu0 %419  ;;  %v433_v52 = vmul.f32 0.00390625, %v426_v46 }
  0xd7   : > { %v431_v49 = vmul.f32 0.00390625, %v420_v47 }
  0xd8   : > { %v456_v60 = vrot.slane %v433_v52, %v455_v4 }
  0xd9   : > { %v429_v51 = vpop.xlane.xlu1 %428  ;;  %v444_v55 = vrot.slane %v431_v49, %v443_v17 }
  0xda   : > { %v423_v53 = vpop.xlane.xlu0 %422  ;;  %v434_v56 = vmul.f32 0.00390625, %v429_v51 }
  0xdb   : > { %v432_v57 = vmul.f32 0.00390625, %v423_v53 }
  0xdc   : > { %v463_v62 = vrot.slane %v434_v56, %v462_v22  ;;  %v467_v22 = vrot.slane %v1307_v28, 4 }
  0xdd   : > { %v449_v59 = vrot.slane %v432_v57, %v448_v23  ;;  %v253_v8 = vpop.permute.xlu1 %252 }
  0xde   : > { %v244_v61 = vpop.permute.xlu0 %243 }
  0xdf   : > { %v451_v63 = vsel %vm450_vm0, %v449_v59, %v444_v55  ;;  %v245_v0 = vmul.f32 %v244_v61, %v236_v58  ;;  %v246_v1 = vmul.f32 %v244_v61, %v237_v54  ;;  %v554_v54 = vstv %s837_s17 }
  0xe0   : > { %v458_v12 = vsel %vm457_vm1, %v456_v60, %v451_v63 }
  0xe1   : > { %v254_v15 = vadd.f32 %v253_v8, %v245_v0  ;;  %v255_v16 = vadd.f32 %v253_v8, %v246_v1  ;;  %v465_v17 = vsel %vm464_vm2, %v463_v62, %v458_v12 }
  0xe2   : > { %v264_v41 = vpop.permute.xlu0 %263 }
  0xe3   : > { %v257_v18 = vmax.f32 %v255_v16, 0.0  ;;  %v256_v19 = vmax.f32 %v254_v15, 0.0 }
  0xe5   : > { %795 = vmatprep.subr.msk.mxu0 %vm322_vm3, %v257_v18  ;;  %834 = vmatprep.subr.msk.mxu1 %vm322_vm3, %v257_v18 }
  0xe6   : > { %796 = vmatpush1.msk.msra.mxu0 %vm322_vm3, %v256_v19  ;;  %835 = vmatpush1.msk.msra.mxu1 %vm322_vm3, %v256_v19  ;;  %v272_v47 = vpop.permute.xlu0 %271 }
  0xe7   : > { %829 = vmatprep.subr.mxu1 %v1101_v27 }
 0x106   : > { %v293_v3 = vpop.trf.xlu1 }
 0x107   : > { %797 = vmatmul.mubr.msk.f32.vlgmr.msra.gmra.mxu0 %vm309_vm4, %v293_v3 }
 0x108   : > { %399 = vmatprep.mubr.f32.mxu0 %v1101_v27 }
 0x10a   : > { %v294_v4 = vpop.trf.xlu1 }
 0x10b   : > { %798 = vmatmul.mubr.msk.f32.gmra.mxu0 %vm309_vm4, %v294_v4 }
 0x10c   : > { %405 = vmatprep.mubr.f32.mxu0 %v1101_v27 }
 0x10e   : > { %v295_v20 = vpop.trf.xlu1 }
 0x10f   : > { %799 = vmatmul.mubr.msk.f32.gmra.mxu0 %vm309_vm4, %v295_v20 }
 0x112   : > { %v296_v23 = vpop.trf.xlu1 }
 0x113   : > { %800 = vmatmul.mubr.msk.f32.vlgmr.msra.gmra.mxu1 %vm309_vm4, %v296_v23 }
 0x114   : > { %830 = vmatpush3.xpose.msk.msra.mxu1 %vm471_vm5, %v467_v22  ;;  %831 = vmatprep.mubr.msk.f32.mxu1 %vm1102_vm6, %v1101_v27 }
 0x117   : > { %832 = vmatmul.mubr.msk.f32.vlgmr.msra.gmra.mxu1 %vm471_vm5, %v465_v17 }
 0x126   : > { %v268_v42 = vpop.permute.xlu1 %267 }
 0x1c7   : > { %v395_v27 = vpop.f32.mrf.mxu0 }
 0x1c8   : > { %v396_v44 = vadd.f32 %v395_v27, %v264_v41 }
 0x1c9   : > { %v397_v38 = vpop.f32.mrf.mxu0 }
 0x1ca   : > { %v398_v45 = vadd.f32 %v397_v38, %v264_v41  ;;  %v804_v48 = vmul.f32 -1.442695, %v396_v44 }
 0x1cb   : > { %v401_v39 = vpop.f32.mrf.mxu0 }
 0x1cc   : > { %v402_v46 = vadd.f32 %v401_v39, %v268_v42  ;;  %v805_v50 = vmul.f32 -1.442695, %v398_v45  ;;  %903 = vpow2.f32 %v804_v48 }
 0x1cd   : > { %v403_v40 = vpop.f32.mrf.mxu0 }
 0x1ce   : > { %v404_v49 = vadd.f32 %v403_v40, %v268_v42  ;;  %v806_v52 = vmul.f32 -1.442695, %v402_v46  ;;  %905 = vpow2.f32 %v805_v50 }
 0x1cf   : > { %v407_v43 = vpop.f32.mrf.mxu0 }
 0x1d0   : > { %v408_v51 = vadd.f32 %v407_v43, %v272_v47  ;;  %907 = vpow2.f32 %v806_v52 }
 0x1d1   : > { %v409_v21 = vpop.f32.mrf.mxu0 }
 0x1d2   : > { %v410_v53 = vadd.f32 %v409_v21, %v272_v47  ;;  %v808_v55 = vmul.f32 -1.442695, %v408_v51 }
 0x1d3   : > { %v413_v26 = vpop.f32.mrf.mxu1 }
 0x1d4   : > { %v809_v56 = vmul.f32 -1.442695, %v410_v53 }
 0x1d5   : > { %v415_v31 = vpop.f32.mrf.mxu1 }
 0x1d7   : > { %v542_v32 = vpop.f32.mrf.mxu1 }
 0x1d8   : > { %v543_v33 = vadd.f32 %v542_v32, %v469_v30 }
 0x1d9   : > { %v833_v28 = vpop.f32.mrf.mxu1  ;;  %v904_v1 = vpop.eup %903 }
 0x1da   : > { %v546_v35 = vmax.f32 %v543_v33, 0.0  ;;  %v586_v15 = vadd.f32 1.0, %v904_v1 }
 0x1db   : > { %v906_v8 = vpop.eup %905 }
 0x1dc   : > { %v549_v36 = vmul.f32 %v547_v34, %v546_v35  ;;  %v587_v17 = vadd.f32 1.0, %v906_v8 }
 0x1dd   : > { %v908_v12 = vpop.eup %907 }
 0x1de   : > { %v551_v37 = vsel %vm550_vm7, %v549_v36, 0.0  ;;  %v588_v19 = vadd.f32 1.0, %v908_v12 }
 0x1df   : > { %552 = vadd.xlane.f32.xlu0 %v551_v37 }
 0x1f5   : > { %275 = vbcast.lane.b32.xlu0 %v1310_v29, 280  ;;  %v807_v29 = vmul.f32 -1.442695, %v404_v49 }
 0x1f7   : > { %909 = vpow2.f32 %v807_v29 }
 0x1f8   : > { %911 = vpow2.f32 %v808_v55 }
 0x1f9   : > { %913 = vpow2.f32 %v809_v56 }
 0x204   : > { %v910_v16 = vpop.eup %909 }
 0x205   : > { %v912_v18 = vpop.eup %911  ;;  %v589_v20 = vadd.f32 1.0, %v910_v16 }
 0x206   : > { %v914_v3 = vpop.eup %913  ;;  %v590_v22 = vadd.f32 1.0, %v912_v18 }
 0x207   : > { %v591_v24 = vadd.f32 1.0, %v914_v3 }
 0x268   : > { %v553_v57 = vpop.xlane.xlu0 %552 }
 0x269   : > { %v555_v58 = vadd.f32 %v554_v54, %v553_v57 }
 0x26b   : > { %v803_v59 = vmul.f32 -1.442695, %v555_v58 }
 0x26c   : > { %v276_v60 = vpop.permute.xlu0 %275 }
 0x26d   : > { %915 = vpow2.f32 %v803_v59  ;;  %v414_v61 = vadd.f32 %v413_v26, %v276_v60  ;;  %v416_v62 = vadd.f32 %v415_v31, %v276_v60 }
 0x26f   : > { %v810_v63 = vmul.f32 -1.442695, %v414_v61  ;;  %v811_v0 = vmul.f32 -1.442695, %v416_v62 }
 0x271   : > { %917 = vpow2.f32 %v810_v63 }
 0x272   : > { %919 = vpow2.f32 %v811_v0 }
 0x273   : > { %921 = vrcp.f32 %v586_v15 }
 0x274   : > { %923 = vrcp.f32 %v587_v17 }
 0x275   : > { %925 = vrcp.f32 %v588_v19 }
 0x27a   : > { %v916_v4 = vpop.eup %915 }
 0x27b   : > { %v559_v23 = vadd.f32 1.0, %v916_v4 }
 0x27d   : > { %927 = vrcp.f32 %v559_v23 }
 0x27e   : > { %v918_v26 = vpop.eup %917  ;;  %929 = vrcp.f32 %v589_v20 }
 0x27f   : > { %v920_v30 = vpop.eup %919  ;;  %931 = vrcp.f32 %v590_v22  ;;  %v592_v31 = vadd.f32 1.0, %v918_v26 }
 0x280   : > { %933 = vrcp.f32 %v591_v24  ;;  %v593_v32 = vadd.f32 1.0, %v920_v30  ;;  %v922_v33 = vpop.eup %921 }
 0x281   : > { %935 = vrcp.f32 %v592_v31  ;;  %v924_v34 = vpop.eup %923 }
 0x282   : > { %937 = vrcp.f32 %v593_v32  ;;  %v926_v28 = vpop.eup %925 }
 0x28a   : > { %v928_v35 = vpop.eup %927 }
 0x28b   : > { %v930_v36 = vpop.eup %929  ;;  %v613_v37 = vrot.slane %v928_v35, %v240_v25 }
 0x28c   : > { %v932_v27 = vpop.eup %931 }
 0x28d   : > { %v934_v38 = vpop.eup %933  ;;  %v614_v39 = vadd.f32 %v922_v33, %v613_v37  ;;  %v615_v40 = vadd.f32 %v924_v34, %v613_v37  ;;  %v616_v41 = vadd.f32 %v926_v28, %v613_v37  ;;  %v617_v42 = vadd.f32 %v930_v36, %v613_v37 }
 0x28e   : > { %v936_v43 = vpop.eup %935  ;;  %v618_v44 = vadd.f32 %v932_v27, %v613_v37  ;;  %v619_v45 = vadd.f32 %v934_v38, %v613_v37 }
 0x28f   : > { %v938_v46 = vpop.eup %937  ;;  %v812_v47 = vmul.f32 -1.442695, %v614_v39  ;;  %v813_v21 = vmul.f32 -1.442695, %v615_v40  ;;  %v814_v48 = vmul.f32 -1.442695, %v616_v41  ;;  %v620_v49 = vadd.f32 %v936_v43, %v613_v37 }
 0x290   : > { %v815_v50 = vmul.f32 -1.442695, %v617_v42  ;;  %v621_v51 = vadd.f32 %v938_v46, %v613_v37  ;;  %v816_v52 = vmul.f32 -1.442695, %v618_v44  ;;  %v817_v2 = vmul.f32 -1.442695, %v619_v45 }
 0x291   : > { %939 = vpow2.f32 %v812_v47  ;;  %v818_v25 = vmul.f32 -1.442695, %v620_v49 }
 0x292   : > { %941 = vpow2.f32 %v813_v21  ;;  %v819_v53 = vmul.f32 -1.442695, %v621_v51 }
 0x293   : > { %943 = vpow2.f32 %v814_v48 }
 0x294   : > { %945 = vpow2.f32 %v815_v50 }
 0x295   : > { %947 = vpow2.f32 %v816_v52 }
 0x296   : > { %949 = vpow2.f32 %v817_v2 }
 0x297   : > { %951 = vpow2.f32 %v818_v25 }
 0x298   : > { %953 = vpow2.f32 %v819_v53 }
 0x29e   : > { %v940_v29 = vpop.eup %939 }
 0x29f   : > { %v942_v54 = vpop.eup %941  ;;  %v646_v55 = vadd.f32 1.0, %v940_v29 }
 0x2a0   : > { %v944_v56 = vpop.eup %943  ;;  %v647_v57 = vadd.f32 1.0, %v942_v54 }
 0x2a1   : > { %v946_v58 = vpop.eup %945  ;;  %v648_v59 = vadd.f32 1.0, %v944_v56  ;;  %955 = vrcp.f32 %v646_v55 }
 0x2a2   : > { %v948_v60 = vpop.eup %947  ;;  %v649_v61 = vadd.f32 1.0, %v946_v58  ;;  %957 = vrcp.f32 %v647_v57 }
 0x2a3   : > { %v950_v62 = vpop.eup %949  ;;  %v650_v63 = vadd.f32 1.0, %v948_v60  ;;  %959 = vrcp.f32 %v648_v59 }
 0x2a4   : > { %v952_v0 = vpop.eup %951  ;;  %v651_v1 = vadd.f32 1.0, %v950_v62  ;;  %961 = vrcp.f32 %v649_v61 }
 0x2a5   : > { %v954_v8 = vpop.eup %953  ;;  %963 = vrcp.f32 %v650_v63  ;;  %v652_v12 = vadd.f32 1.0, %v952_v0 }
 0x2a6   : > { %965 = vrcp.f32 %v651_v1  ;;  %v653_v15 = vadd.f32 1.0, %v954_v8 }
 0x2a7   : > { %967 = vrcp.f32 %v652_v12 }
 0x2a8   : > { %969 = vrcp.f32 %v653_v15 }
 0x2ae   : > { %v956_v16 = vpop.eup %955 }
 0x2af   : > { %v958_v17 = vpop.eup %957  ;;  %v670_v18 = vmul.f32 %v956_v16, %v1268_v7 }
 0x2b0   : > { %v960_v19 = vpop.eup %959  ;;  %v671_v3 = vmul.f32 %v958_v17, %v1272_v9 }
 0x2b1   : > { %v962_v4 = vpop.eup %961  ;;  %v672_v20 = vmul.f32 %v960_v19, %v1280_v13  ;;  %678 = vst [vmem:[%s203_s22] sm:$0xff] %v670_v18 }
 0x2b2   : > { %v964_v22 = vpop.eup %963  ;;  %v673_v23 = vmul.f32 %v962_v4, %v1282_v14  ;;  %679 = vst [vmem:[%s203_s22 + $0x8] sm:$0xff] %v671_v3 }
 0x2b3   : > { %v966_v24 = vpop.eup %965  ;;  %v674_v26 = vmul.f32 %v964_v22, %v1264_v5  ;;  %680 = vst [vmem:[%s203_s22 + $0x10] sm:$0xff] %v672_v20 }
 0x2b4   : > { %v968_v7 = vpop.eup %967  ;;  %v675_v9 = vmul.f32 %v966_v24, %v1266_v6  ;;  %681 = vst [vmem:[%s203_s22 + $0x18] sm:$0xff] %v673_v23 }
 0x2b5   : > { %v970_v13 = vpop.eup %969  ;;  %v676_v30 = vmul.f32 %v968_v7, %v1274_v10  ;;  %682 = vst [vmem:[%s203_s22 + $0x20] sm:$0xff] %v674_v26 }
 0x2b6   : > { %v677_v5 = vmul.f32 %v970_v13, %v1276_v11  ;;  %683 = vst [vmem:[%s203_s22 + $0x28] sm:$0xff] %v675_v9 }
 0x2b7   : > { %684 = vst [vmem:[%s203_s22 + $0x30] sm:$0xff] %v676_v30 }
 0x2b8   : > { %685 = vst [vmem:[%s203_s22 + $0x38] sm:$0xff] %v677_v5 }
 0x2b9   : > { %1038 = shalt.err (!%p1035_p0)
}
 0x2ba   : > { %s1039_s21 = scalar_lea.hbm %s1350_s7, 1024  ;;  %s1043_s29 = scalar_lea.hbm %s1398_s3, 8192 }
 0x2bb   : > { %p1040_p5 = scmp.ne.s32.totalorder %s1350_s7, %s1039_s21  ;;  %p1044_p4 = scmp.lt.s32.totalorder %s1350_s7, %s1398_s3 }
 0x2bc   : > { %p1045_p6 = scmp.lt.s32.totalorder %s1043_s29, %s1039_s21 }
 0x2bd   : > { %p1041_p9 = pnand %p1040_p5, %p1414_p10 }
 0x2be   : > { %p1046_p8 = por %p1045_p6, %p1044_p4 }
 0x2bf   : > { %p1042_p1 = pneg %p1041_p9 }
 0x2c1   : > { %p1047_p3 = pnand %p1046_p8, %p1042_p1 }
 0x2c3   : > { %1050 = shalt.err (!%p1047_p3)
}
 0x2c4   : > { %s1104_s17 = smov 256   ;;  %s1105_s22 = smov 16  }
 0x2c5   : > { %844 = dma.vmem_to_hbm [thread:$0]  (%p1414_p10), %s1352_s25, 1024, %s1350_s7, %s687_s16, %s1104_s17, %s1104_s17, %s1105_s22  }
 0x2c6 PF: > { %p861_p7 = scmp.ge.s32.totalorder %s1093_s15, 2  ;;  %s715_s23 = sand.u32 1, %s1081_s12  }
 0x2c7   : > { %p1415_p11 = scmp.ne.s32.totalorder %s1404_s19, 0  ;;  %s716_s30 = scalar_lea.sflag [#allocation4], %s715_s23 }
 0x2c9   : > { %p855_p12 = pnand %p861_p7, %p1415_p11 }
 0x2cb   : > { %p856_p2 = pneg %p855_p12 }
 0x2cd   : > { %1076 = dma.done.wait (%p856_p2), %s716_s30, 1024  }
 0x2ce   : > { %1078 = vsyncadd (%p856_p2), %s716_s30, 4294966272  ;;  %p17_p13 = scmp.ge.s32.totalorder %s1179_s24, 10   ;;  %s1416_s12 = smov %s1085_s13 }
 0x2cf   : > { %s1417_s13 = smov %s1089_s14  ;;  %s1418_s14 = smov %s1196_s5 }
 0x2d0   : > { %s1419_s15 = smov %s1179_s24  ;;  %19 = sbr.rel (!%p17_p13) target bundleno = 6 (0x6), region = 81 }
 0x2d5   :  { %721 = vsyncpa [#allocation3], 1 }
 0x2d6   :  { %723 = vsyncpa [#allocation3 + $0x1], 1 }
 0x2d7   :  { %724 = vsyncpa [#allocation6], 1 }
 0x2d8   :  { %725 = vsyncpa [#allocation4], 1 }
 0x2d9   :  { %727 = vsyncpa [#allocation4 + $0x1], 1 }

</bundles_post_ra>
